<compile_context>
chip_gen: v6e
topology: v6e:2x2x1
jax: 0.10.0
libtpu: 0.0.40
codegen_flags: <defaults>
</compile_context>

<pallas_src>
import math

import jax
import jax.numpy as jnp
from jax.experimental import pallas as pl
from jax.experimental.pallas import tpu as pltpu

# ------------------------- synthetic "config" ------------------------------
KEYBOARD_SHAPE = (4, 8)    # 32 elements
POSITION_SHAPE = (2,)      # 2 elements
POSSIBLE_SHAPE = (30,)     # 30 elements
INPUT_SIZE = 32 + 2 + 30   # config.input_size = 64
NUM_FEATURES = 32          # config.num_features
NUM_ACTIONS = 16           # words.num_words
HIDDEN = 1024              # fixed in the module definition
NEG_SLOPE = 0.01           # nn.LeakyReLU default negative_slope

# ----- packed-parameter row offsets (all 8-aligned => free static ref views) --
# p128: lane width 128
_W1_OFF = 0                      # (128,128): rows 0:64 = w1, cols 0:32 real
_W2_OFF = 128                    # (128,128): rows 0:32 = w2, cols 0:32 real
_BIAS_OFF = 256                  # (8,128): row0 b1, row1 b2, row2 [bi2|bf2]
_WHEAD_OFF = 264                 # (1024,128): cols 0:16 = wi2, 16:48 = wf2
_P128_ROWS = _WHEAD_OFF + HIDDEN  # 1288

# p1024: lane width 1024
_WI1S_OFF = 0                    # wi1[:32]
_WI1N_OFF = 32                   # wi1[32:64]
_WF1S_OFF = 64                   # wf1[:32]
_WF1A_OFF = 96                   # (32,1024): rows 0:16 = wf1[32:48], rest 0
_B1H_OFF = 128                   # rows 128:130 = [bi1; bf1]
_P1024_ROWS = 136


def _leaky_relu(x):
    return jnp.where(x >= 0, x, NEG_SLOPE * x)


# ------------------------------ kernel --------------------------------------
def icm_kernel(x_ref, p128_ref, p1024_ref, out_ref):
    F = NUM_FEATURES

    xv = x_ref[...]                       # (8,128) single vreg tile
    states = xv[0:2, :]                   # rows 0/1: state / next_state (lane padded)
    a_pad = xv[2:3, 0:32]                 # action one-hot in lanes 0:16, zeros 16:32

    # ---- encoder: both states through one matmul chain -------------------
    w1 = p128_ref[_W1_OFF:_W1_OFF + 128, :]            # zero-padded Linear(64->32)
    w2 = p128_ref[_W2_OFF:_W2_OFF + 128, :]            # zero-padded Linear(32->32)
    bias_slab = p128_ref[_BIAS_OFF:_BIAS_OFF + 8, :]   # (8,128)
    b1 = bias_slab[0:1, :]
    b2 = bias_slab[1:2, :]
    b_head = bias_slab[2:3, :]                         # [bi2 | bf2 | 0...]

    h = _leaky_relu(jnp.dot(states, w1, preferred_element_type=jnp.float32) + b1)
    enc = jnp.dot(h, w2, preferred_element_type=jnp.float32) + b2   # (2,128), cols 32: are 0

    s32 = enc[0:1, 0:F]                   # state encoding   (1,32)
    n32 = enc[1:2, 0:F]                   # next-state enc.  (1,32)

    # ---- first layers of inverse / forward nets (concat == split matmuls) --
    wi1_s = p1024_ref[_WI1S_OFF:_WI1S_OFF + F, :]
    wi1_n = p1024_ref[_WI1N_OFF:_WI1N_OFF + F, :]
    wf1_s = p1024_ref[_WF1S_OFF:_WF1S_OFF + F, :]
    wf1_a = p1024_ref[_WF1A_OFF:_WF1A_OFF + 32, :]
    b1h = p1024_ref[_B1H_OFF:_B1H_OFF + 2, :]          # (2,1024) = [bi1; bf1]

    hi = (jnp.dot(s32, wi1_s, preferred_element_type=jnp.float32)
          + jnp.dot(n32, wi1_n, preferred_element_type=jnp.float32))
    hf = (jnp.dot(s32, wf1_s, preferred_element_type=jnp.float32)
          + jnp.dot(a_pad, wf1_a, preferred_element_type=jnp.float32))
    hh = _leaky_relu(jnp.concatenate([hi, hf], axis=0) + b1h)        # (2,1024)

    # ---- fused second-layer heads: single K=1024 MXU chain ----------------
    w_head = p128_ref[_WHEAD_OFF:_WHEAD_OFF + HIDDEN, :]             # (1024,128)
    head = jnp.dot(hh, w_head, preferred_element_type=jnp.float32) + b_head  # (2,128)

    # ---- single lane-dense output block ------------------------------------
    out_ref[0:2, :] = head                 # row0[:16]=logits, row1[16:48]=pred
    out_ref[2:4, :] = enc                  # row3[:32]=next_state_encoded
    out_ref[4:8, :] = jnp.zeros((4, 128), jnp.float32)


# --------------------------- parameter packing --------------------------------
def pack_params(p):
    """Pack the 14 raw tensors into two contiguous lane-dense fp32 buffers."""
    F, A, H = NUM_FEATURES, NUM_ACTIONS, HIDDEN

    p128 = jnp.zeros((_P128_ROWS, 128), jnp.float32)
    p128 = p128.at[_W1_OFF:_W1_OFF + INPUT_SIZE, 0:F].set(p["w1"])      # (64,32)
    p128 = p128.at[_W2_OFF:_W2_OFF + F, 0:F].set(p["w2"])               # (32,32)
    p128 = p128.at[_BIAS_OFF + 0, 0:F].set(p["b1"].reshape(-1))
    p128 = p128.at[_BIAS_OFF + 1, 0:F].set(p["b2"].reshape(-1))
    p128 = p128.at[_BIAS_OFF + 2, 0:A].set(p["bi2"].reshape(-1))
    p128 = p128.at[_BIAS_OFF + 2, A:A + F].set(p["bf2"].reshape(-1))
    p128 = p128.at[_WHEAD_OFF:_WHEAD_OFF + H, 0:A].set(p["wi2"])        # (1024,16)
    p128 = p128.at[_WHEAD_OFF:_WHEAD_OFF + H, A:A + F].set(p["wf2"])    # (1024,32)

    p1024 = jnp.zeros((_P1024_ROWS, H), jnp.float32)
    p1024 = p1024.at[_WI1S_OFF:_WI1S_OFF + F, :].set(p["wi1"][:F])
    p1024 = p1024.at[_WI1N_OFF:_WI1N_OFF + F, :].set(p["wi1"][F:])
    p1024 = p1024.at[_WF1S_OFF:_WF1S_OFF + F, :].set(p["wf1"][:F])
    p1024 = p1024.at[_WF1A_OFF:_WF1A_OFF + A, :].set(p["wf1"][F:])
    p1024 = p1024.at[_B1H_OFF + 0, :].set(p["bi1"].reshape(-1))
    p1024 = p1024.at[_B1H_OFF + 1, :].set(p["bf1"].reshape(-1))

    return {"p128": p128, "p1024": p1024}


# ------------------------------ wrapper ----------------------------------------
def _flatten_state(state):
    x_keyboard, x_position, x_possible = state
    return jnp.concatenate(
        [x_keyboard.reshape(-1), x_position.reshape(-1), x_possible.reshape(-1)]
    ).astype(jnp.float32)                                   # (INPUT_SIZE,)


def _pack_inputs(state, next_state, action):
    x = jnp.zeros((8, 128), jnp.float32)
    x = x.at[0, :INPUT_SIZE].set(_flatten_state(state))
    x = x.at[1, :INPUT_SIZE].set(_flatten_state(next_state))
    x = x.at[2, :NUM_ACTIONS].set(action.astype(jnp.float32).reshape(-1))
    return x


@jax.jit
def icm_forward(packed, state, next_state, action):
    x = _pack_inputs(state, next_state, action)
    vmem_spec = pl.BlockSpec(memory_space=pltpu.MemorySpace.VMEM)

    out = pl.pallas_call(
        icm_kernel,
        out_shape=jax.ShapeDtypeStruct((8, 128), jnp.float32),
        in_specs=[vmem_spec, vmem_spec, vmem_spec],
        out_specs=vmem_spec,
    )(x, packed["p128"], packed["p1024"])

    logits = out[0:1, 0:NUM_ACTIONS]                               # (1,16)
    pred = out[1:2, NUM_ACTIONS:NUM_ACTIONS + NUM_FEATURES]        # (1,32)
    next_enc = out[3:4, 0:NUM_FEATURES]                            # (1,32)
    return logits, pred, next_enc


# --------------------------- parameter init ------------------------------------
def _xavier_uniform(key, fan_in, fan_out):
    bound = math.sqrt(6.0 / (fan_in + fan_out))
    # stored as (in, out) so the math is x @ W + b
    return jax.random.uniform(key, (fan_in, fan_out), jnp.float32, -bound, bound)


def init_params(key):
    keys = jax.random.split(key, 6)
    return {
        # Encoder
        "w1": _xavier_uniform(keys[0], INPUT_SIZE, NUM_FEATURES),
        "b1": jnp.zeros((1, NUM_FEATURES), jnp.float32),
        "w2": _xavier_uniform(keys[1], NUM_FEATURES, NUM_FEATURES),
        "b2": jnp.zeros((1, NUM_FEATURES), jnp.float32),
        # inverse_net: Linear(2F, 1024) -> LeakyReLU -> Linear(1024, A)
        "wi1": _xavier_uniform(keys[2], 2 * NUM_FEATURES, HIDDEN),
        "bi1": jnp.zeros((1, HIDDEN), jnp.float32),
        "wi2": _xavier_uniform(keys[3], HIDDEN, NUM_ACTIONS),
        "bi2": jnp.zeros((1, NUM_ACTIONS), jnp.float32),
        # forward_net: Linear(F+A, 1024) -> LeakyReLU -> Linear(1024, F)
        "wf1": _xavier_uniform(keys[4], NUM_FEATURES + NUM_ACTIONS, HIDDEN),
        "bf1": jnp.zeros((1, HIDDEN), jnp.float32),
        "wf2": _xavier_uniform(keys[5], HIDDEN, NUM_FEATURES),
        "bf2": jnp.zeros((1, NUM_FEATURES), jnp.float32),
    }


# ------------------------ pure-JAX reference ------------------------------------
def icm_reference(params, state, next_state, action):
    def encode(x):
        h = _leaky_relu(x @ params["w1"] + params["b1"])
        return h @ params["w2"] + params["b2"]

    s = encode(_flatten_state(state).reshape(1, -1))
    n = encode(_flatten_state(next_state).reshape(1, -1))
    a = action.astype(jnp.float32).reshape(1, NUM_ACTIONS)
    logits = _leaky_relu(jnp.concatenate([s, n], 1) @ params["wi1"]
                         + params["bi1"]) @ params["wi2"] + params["bi2"]
    pred = _leaky_relu(jnp.concatenate([s, a], 1) @ params["wf1"]
                       + params["bf1"]) @ params["wf2"] + params["bf2"]
    return logits, pred, n


# --------------------------------- main -----------------------------------------
if __name__ == "__main__":
    key = jax.random.PRNGKey(0)
    k_param, k_s, k_ns, k_a = jax.random.split(key, 4)

    params = init_params(k_param)
    packed = pack_params(params)      # one-time packing (not in the per-step path)

    def make_state(k):
        k1, k2, k3 = jax.random.split(k, 3)
        return (jax.random.normal(k1, KEYBOARD_SHAPE, jnp.float32),
                jax.random.normal(k2, POSITION_SHAPE, jnp.float32),
                jax.random.normal(k3, POSSIBLE_SHAPE, jnp.float32))

    state = make_state(k_s)
    next_state = make_state(k_ns)
    act_idx = jax.random.randint(k_a, (), 0, NUM_ACTIONS)
    action = jax.nn.one_hot(act_idx, NUM_ACTIONS, dtype=jnp.float32).reshape(1, -1)

    logits, pred, next_enc = icm_forward(packed, state, next_state, action)
    jax.block_until_ready((logits, pred, next_enc))

    # correctness check against a pure-JAX reference
    r_logits, r_pred, r_next_enc = icm_reference(params, state, next_state, action)
    assert jnp.allclose(logits, r_logits, atol=1e-4, rtol=1e-4)
    assert jnp.allclose(pred, r_pred, atol=1e-4, rtol=1e-4)
    assert jnp.allclose(next_enc, r_next_enc, atol=1e-4, rtol=1e-4)

    print("KERNEL_OK")
</pallas_src>

<mosaic_0001>
module attributes {stable_mosaic.version = 11 : i64} {
  func.func @icm_kernel(%arg0: memref<8x128xf32, #tpu.memory_space<vmem>>, %arg1: memref<1288x128xf32, #tpu.memory_space<vmem>>, %arg2: memref<136x1024xf32, #tpu.memory_space<vmem>>, %arg3: memref<8x128xf32, #tpu.memory_space<vmem>>) attributes {dimension_semantics = [], scalar_prefetch = 0 : i64, scratch_operands = 0 : i64, tpu.core_type = #tpu.core_type<tc>} {
    %c0 = arith.constant 0 : index
    %c0_0 = arith.constant 0 : index
    %0 = vector.load %arg0[%c0, %c0_0] : memref<8x128xf32, #tpu.memory_space<vmem>>, vector<8x128xf32>
    %1 = vector.extract_strided_slice %0 {offsets = [0, 0], sizes = [2, 128], strides = [1, 1]} : vector<8x128xf32> to vector<2x128xf32>
    %2 = vector.extract_strided_slice %0 {offsets = [2, 0], sizes = [1, 32], strides = [1, 1]} : vector<8x128xf32> to vector<1x32xf32>
    %c0_1 = arith.constant 0 : index
    %c0_2 = arith.constant 0 : index
    %3 = vector.load %arg1[%c0_1, %c0_2] : memref<1288x128xf32, #tpu.memory_space<vmem>>, vector<128x128xf32>
    %c128 = arith.constant 128 : index
    %c0_3 = arith.constant 0 : index
    %4 = vector.load %arg1[%c128, %c0_3] : memref<1288x128xf32, #tpu.memory_space<vmem>>, vector<128x128xf32>
    %c256 = arith.constant 256 : index
    %c0_4 = arith.constant 0 : index
    %5 = vector.load %arg1[%c256, %c0_4] : memref<1288x128xf32, #tpu.memory_space<vmem>>, vector<8x128xf32>
    %6 = vector.extract_strided_slice %5 {offsets = [0, 0], sizes = [1, 128], strides = [1, 1]} : vector<8x128xf32> to vector<1x128xf32>
    %7 = vector.extract_strided_slice %5 {offsets = [1, 0], sizes = [1, 128], strides = [1, 1]} : vector<8x128xf32> to vector<1x128xf32>
    %8 = vector.extract_strided_slice %5 {offsets = [2, 0], sizes = [1, 128], strides = [1, 1]} : vector<8x128xf32> to vector<1x128xf32>
    %cst = arith.constant dense<0.000000e+00> : vector<2x128xf32>
    %9 = tpu.matmul %1, %3, %cst {dimension_numbers = #tpu.dot_dimension_numbers<[1], [0], [0], [1], [0, 0, 1, 1], [], []>} : vector<2x128xf32>, vector<128x128xf32>, vector<2x128xf32> -> vector<2x128xf32>
    %10 = vector.broadcast %6 : vector<1x128xf32> to vector<2x128xf32>
    %11 = arith.addf %9, %10 : vector<2x128xf32>
    %cst_5 = arith.constant 0.000000e+00 : f32
    %12 = vector.broadcast %cst_5 : f32 to vector<2x128xf32>
    %13 = arith.cmpf oge, %11, %12 : vector<2x128xf32>
    %cst_6 = arith.constant 0.00999999977 : f32
    %14 = vector.broadcast %cst_6 : f32 to vector<2x128xf32>
    %15 = arith.mulf %14, %11 : vector<2x128xf32>
    %16 = arith.select %13, %11, %15 : vector<2x128xi1>, vector<2x128xf32>
    %cst_7 = arith.constant dense<0.000000e+00> : vector<2x128xf32>
    %17 = tpu.matmul %16, %4, %cst_7 {dimension_numbers = #tpu.dot_dimension_numbers<[1], [0], [0], [1], [0, 0, 1, 1], [], []>} : vector<2x128xf32>, vector<128x128xf32>, vector<2x128xf32> -> vector<2x128xf32>
    %18 = vector.broadcast %7 : vector<1x128xf32> to vector<2x128xf32>
    %19 = arith.addf %17, %18 : vector<2x128xf32>
    %20 = vector.extract_strided_slice %19 {offsets = [0, 0], sizes = [1, 32], strides = [1, 1]} : vector<2x128xf32> to vector<1x32xf32>
    %21 = vector.extract_strided_slice %19 {offsets = [1, 0], sizes = [1, 32], strides = [1, 1]} : vector<2x128xf32> to vector<1x32xf32>
    %c0_8 = arith.constant 0 : index
    %c0_9 = arith.constant 0 : index
    %22 = vector.load %arg2[%c0_8, %c0_9] : memref<136x1024xf32, #tpu.memory_space<vmem>>, vector<32x1024xf32>
    %c32 = arith.constant 32 : index
    %c0_10 = arith.constant 0 : index
    %23 = vector.load %arg2[%c32, %c0_10] : memref<136x1024xf32, #tpu.memory_space<vmem>>, vector<32x1024xf32>
    %c64 = arith.constant 64 : index
    %c0_11 = arith.constant 0 : index
    %24 = vector.load %arg2[%c64, %c0_11] : memref<136x1024xf32, #tpu.memory_space<vmem>>, vector<32x1024xf32>
    %c96 = arith.constant 96 : index
    %c0_12 = arith.constant 0 : index
    %25 = vector.load %arg2[%c96, %c0_12] : memref<136x1024xf32, #tpu.memory_space<vmem>>, vector<32x1024xf32>
    %c128_13 = arith.constant 128 : index
    %c0_14 = arith.constant 0 : index
    %26 = vector.load %arg2[%c128_13, %c0_14] : memref<136x1024xf32, #tpu.memory_space<vmem>>, vector<2x1024xf32>
    %cst_15 = arith.constant dense<0.000000e+00> : vector<1x1024xf32>
    %27 = tpu.matmul %20, %22, %cst_15 {dimension_numbers = #tpu.dot_dimension_numbers<[1], [0], [0], [1], [0, 0, 1, 1], [], []>} : vector<1x32xf32>, vector<32x1024xf32>, vector<1x1024xf32> -> vector<1x1024xf32>
    %cst_16 = arith.constant dense<0.000000e+00> : vector<1x1024xf32>
    %28 = tpu.matmul %21, %23, %cst_16 {dimension_numbers = #tpu.dot_dimension_numbers<[1], [0], [0], [1], [0, 0, 1, 1], [], []>} : vector<1x32xf32>, vector<32x1024xf32>, vector<1x1024xf32> -> vector<1x1024xf32>
    %29 = arith.addf %27, %28 : vector<1x1024xf32>
    %cst_17 = arith.constant dense<0.000000e+00> : vector<1x1024xf32>
    %30 = tpu.matmul %20, %24, %cst_17 {dimension_numbers = #tpu.dot_dimension_numbers<[1], [0], [0], [1], [0, 0, 1, 1], [], []>} : vector<1x32xf32>, vector<32x1024xf32>, vector<1x1024xf32> -> vector<1x1024xf32>
    %cst_18 = arith.constant dense<0.000000e+00> : vector<1x1024xf32>
    %31 = tpu.matmul %2, %25, %cst_18 {dimension_numbers = #tpu.dot_dimension_numbers<[1], [0], [0], [1], [0, 0, 1, 1], [], []>} : vector<1x32xf32>, vector<32x1024xf32>, vector<1x1024xf32> -> vector<1x1024xf32>
    %32 = arith.addf %30, %31 : vector<1x1024xf32>
    %33 = tpu.concatenate %29, %32 in 0 : vector<1x1024xf32>, vector<1x1024xf32> -> vector<2x1024xf32>
    %34 = arith.addf %33, %26 : vector<2x1024xf32>
    %cst_19 = arith.constant 0.000000e+00 : f32
    %35 = vector.broadcast %cst_19 : f32 to vector<2x1024xf32>
    %36 = arith.cmpf oge, %34, %35 : vector<2x1024xf32>
    %cst_20 = arith.constant 0.00999999977 : f32
    %37 = vector.broadcast %cst_20 : f32 to vector<2x1024xf32>
    %38 = arith.mulf %37, %34 : vector<2x1024xf32>
    %39 = arith.select %36, %34, %38 : vector<2x1024xi1>, vector<2x1024xf32>
    %c264 = arith.constant 264 : index
    %c0_21 = arith.constant 0 : index
    %40 = vector.load %arg1[%c264, %c0_21] : memref<1288x128xf32, #tpu.memory_space<vmem>>, vector<1024x128xf32>
    %cst_22 = arith.constant dense<0.000000e+00> : vector<2x128xf32>
    %41 = tpu.matmul %39, %40, %cst_22 {dimension_numbers = #tpu.dot_dimension_numbers<[1], [0], [0], [1], [0, 0, 1, 1], [], []>} : vector<2x1024xf32>, vector<1024x128xf32>, vector<2x128xf32> -> vector<2x128xf32>
    %42 = vector.broadcast %8 : vector<1x128xf32> to vector<2x128xf32>
    %43 = arith.addf %41, %42 : vector<2x128xf32>
    %c0_23 = arith.constant 0 : index
    %c0_24 = arith.constant 0 : index
    %44 = vector.load %arg3[%c0_23, %c0_24] : memref<8x128xf32, #tpu.memory_space<vmem>>, vector<2x128xf32>
    tpu.vector_store %arg3[%c0_23, %c0_24], %43 {strides = array<i32>} : memref<8x128xf32, #tpu.memory_space<vmem>>, vector<2x128xf32>,
    %c2 = arith.constant 2 : index
    %c0_25 = arith.constant 0 : index
    %45 = vector.load %arg3[%c2, %c0_25] : memref<8x128xf32, #tpu.memory_space<vmem>>, vector<2x128xf32>
    tpu.vector_store %arg3[%c2, %c0_25], %19 {strides = array<i32>} : memref<8x128xf32, #tpu.memory_space<vmem>>, vector<2x128xf32>,
    %cst_26 = arith.constant 0.000000e+00 : f32
    %46 = vector.broadcast %cst_26 : f32 to vector<4x128xf32>
    %c4 = arith.constant 4 : index
    %c0_27 = arith.constant 0 : index
    %47 = vector.load %arg3[%c4, %c0_27] : memref<8x128xf32, #tpu.memory_space<vmem>>, vector<4x128xf32>
    tpu.vector_store %arg3[%c4, %c0_27], %46 {strides = array<i32>} : memref<8x128xf32, #tpu.memory_space<vmem>>, vector<4x128xf32>,
    return
  }
}

</mosaic_0001>

<bundles_post_ra>
// kernel: icm_forward.1
= control target key start
LH: loop header
LB: loop body
LE: loop exit
PB: predicated region body
PF: predicated region fallthrough
CT: control target
= control target key end

     0   :  { %8 = vsyncpa [#allocation3], 0  ;;  %s2488_s0 = inlined_call_operand.vmem [shape: f32[8,128], index: 0, kind: input, shape index: {}]   ;;  %s2489_s1 = inlined_call_operand.hbm [shape: f32[1288,128], index: 1, kind: input, shape index: {}]   ;;  %s2490_s2 = inlined_call_operand.hbm [shape: f32[136,1024], index: 2, kind: input, shape index: {}]   ;;  %s2491_s3 = inlined_call_operand.vmem [shape: f32[8,128], index: 3, kind: output, shape index: {}]  }
   0x1   :  { %9 = vsyncpa [#allocation5], 0  ;;  %s2309_s12 = smov [#allocation2]  }
   0x2   :  { %s17_s13 = sshll.u32 %s2309_s12, 4  ;;  %s18_s13 = int_to_ptr.vmem [resolvable:$true] %s17_s13 }
   0x3   :  { %s2273_s14 = scalar_lea.vmem %s18_s13, 20608  ;;  %p2278_p1 = scmp.lt.s32.totalorder %s18_s13, %s18_s13 }
   0x4   :  { %p2274_p0 = scmp.ne.s32.totalorder %s18_s13, %s2273_s14  ;;  %p2279_p2 = scmp.lt.s32.totalorder %s2273_s14, %s2273_s14 }
   0x6   :  { %p2280_p3 = por %p2279_p2, %p2278_p1 }
   0x8   :  { %p2281_p4 = pnand %p2280_p3, %p2274_p0 }
   0xa   :  { %2284 = shalt.err (!%p2281_p4)
}
   0xb   :  { %s2310_s15 = smov 128   ;;  %s2311_s16 = smov 8  }
   0xc   :  { %23 = dma.hbm_to_vmem [thread:$0]  %s2489_s1, 20608, %s18_s13, [#allocation3], %s2310_s15, %s2310_s15, %s2311_s16  }
   0xd   :  { %s2312_s19 = smov [#allocation4]  }
   0xe   :  { %s29_s20 = sshll.u32 %s2312_s19, 4  ;;  %s30_s20 = int_to_ptr.vmem [resolvable:$true] %s29_s20 }
   0xf   :  { %s2293_s21 = scalar_lea.vmem %s30_s20, 17408  ;;  %p2298_p6 = scmp.lt.s32.totalorder %s30_s20, %s30_s20 }
  0x10   :  { %p2294_p5 = scmp.ne.s32.totalorder %s30_s20, %s2293_s21  ;;  %p2299_p7 = scmp.lt.s32.totalorder %s2293_s21, %s2293_s21 }
  0x12   :  { %p2300_p8 = por %p2299_p7, %p2298_p6 }
  0x14   :  { %p2301_p9 = pnand %p2300_p8, %p2294_p5 }
  0x16   :  { %2304 = shalt.err (!%p2301_p9)
}
  0x17   :  { %s2313_s22 = smov 1024   ;;  %s2314_s23 = smov 64  }
  0x18   :  { %35 = dma.hbm_to_vmem [thread:$0]  %s2490_s2, 17408, %s30_s20, [#allocation5], %s2313_s22, %s2313_s22, %s2314_s23  }
  0x19   :  { %2305 = dma.done.wait [#allocation3], 20608  }
  0x1a   :  { %2306 = vsyncadd [#allocation3], 4294946688 }
  0x1b   :  { %2307 = dma.done.wait [#allocation5], 17408  }
  0x1c   :  { %2308 = vsyncadd [#allocation5], 4294949888  ;;  %v2315_v0 = vmov 0.0   ;;  %vm2316_vm0 = vmmov 0   ;;  %v58_v1 = vld [vmem:[#allocation2 + $0x78] sm:$0xff]  ;;  %v57_v2 = vld [vmem:[#allocation2 + $0x70] sm:$0xff]  ;;  %v76_v39 = vlaneseq }
  0x1d   :  { %1989 = vst [vmem:[%s2491_s3 + $0x4] sm:$0xf] %v2315_v0  ;;  %2186 = vmatprep.subr.mxu0 %v2315_v0  ;;  %2218 = vmatprep.mubr.msk.f32.mxu0 %vm2316_vm0, %v2315_v0  ;;  %v56_v3 = vld [vmem:[#allocation2 + $0x68] sm:$0xff]  ;;  %v55_v4 = vld [vmem:[#allocation2 + $0x60] sm:$0xff]  ;;  %v74_v5 = vld [vmem:[#allocation2 + $0xf8] sm:$0xff]  ;;  %vm365_vm2 = vcmask 261120  }
  0x1e   :  { %2221 = vmatprep.subr.mxu1 %v2315_v0  ;;  %2253 = vmatprep.mubr.msk.f32.mxu1 %vm2316_vm0, %v2315_v0  ;;  %v54_v6 = vld [vmem:[#allocation2 + $0x58] sm:$0xff]  ;;  %v73_v7 = vld [vmem:[#allocation2 + $0xf0] sm:$0xff]  ;;  %v72_v8 = vld [vmem:[#allocation2 + $0xe8] sm:$0xff]  ;;  %v2388_v40 = vshrl.u32 %v76_v39, 7  ;;  %vm1534_vm3 = vcmask 1040384  }
  0x1f   :  { %2187 = vmatpush3.msra.mxu0 %v58_v1  ;;  %2222 = vmatpush3.msra.mxu1 %v74_v5  ;;  %v53_v9 = vld [vmem:[#allocation2 + $0x50] sm:$0xff]  ;;  %v71_v10 = vld [vmem:[#allocation2 + $0xe0] sm:$0xff]  ;;  %v52_v11 = vld [vmem:[#allocation2 + $0x48] sm:$0xff] }
  0x20   :  { %2188 = vmatprep.subr.mxu0 %v2315_v0  ;;  %2223 = vmatprep.subr.mxu1 %v2315_v0  ;;  %v70_v12 = vld [vmem:[#allocation2 + $0xd8] sm:$0xff]  ;;  %v51_v13 = vld [vmem:[#allocation2 + $0x40] sm:$0xff]  ;;  %v69_v14 = vld [vmem:[#allocation2 + $0xd0] sm:$0xff]  ;;  %v78_v41 = vsub.s32 0, %v2388_v40  ;;  %v155_v62 = vsub.s32 1, %v2388_v40 }
  0x21   :  { %2189 = vmatpush3.msra.mxu0 %v57_v2  ;;  %2224 = vmatpush3.msra.mxu1 %v73_v7  ;;  %v50_v15 = vld [vmem:[#allocation2 + $0x38] sm:$0xff]  ;;  %v68_v16 = vld [vmem:[#allocation2 + $0xc8] sm:$0xff]  ;;  %v49_v17 = vld [vmem:[#allocation2 + $0x30] sm:$0xff] }
  0x22   :  { %2190 = vmatprep.subr.mxu0 %v2315_v0  ;;  %2225 = vmatprep.subr.mxu1 %v2315_v0  ;;  %v67_v18 = vld [vmem:[#allocation2 + $0xc0] sm:$0xff]  ;;  %v48_v19 = vld [vmem:[#allocation2 + $0x28] sm:$0xff]  ;;  %v66_v20 = vld [vmem:[#allocation2 + $0xb8] sm:$0xff] }
  0x23   :  { %2191 = vmatpush3.msra.mxu0 %v56_v3  ;;  %2226 = vmatpush3.msra.mxu1 %v72_v8  ;;  %v47_v21 = vld [vmem:[#allocation2 + $0x20] sm:$0xff]  ;;  %v65_v22 = vld [vmem:[#allocation2 + $0xb0] sm:$0xff]  ;;  %v46_v23 = vld [vmem:[#allocation2 + $0x18] sm:$0xff] }
  0x24   :  { %2192 = vmatprep.subr.mxu0 %v2315_v0  ;;  %2227 = vmatprep.subr.mxu1 %v2315_v0  ;;  %v64_v24 = vld [vmem:[#allocation2 + $0xa8] sm:$0xff]  ;;  %v45_v25 = vld [vmem:[#allocation2 + $0x10] sm:$0xff]  ;;  %v63_v26 = vld [vmem:[#allocation2 + $0xa0] sm:$0xff] }
  0x25   :  { %2193 = vmatpush3.msra.mxu0 %v55_v4  ;;  %2228 = vmatpush3.msra.mxu1 %v71_v10  ;;  %v44_v27 = vld [vmem:[#allocation2 + $0x8] sm:$0xff]  ;;  %v62_v28 = vld [vmem:[#allocation2 + $0x98] sm:$0xff]  ;;  %v43_v29 = vld [vmem:[#allocation2] sm:$0xff] }
  0x26   :  { %2194 = vmatprep.subr.mxu0 %v2315_v0  ;;  %2229 = vmatprep.subr.mxu1 %v2315_v0  ;;  %v2379_v30 = vld [vmem:[%s2488_s0] sm:$0xff]  ;;  %v61_v31 = vld [vmem:[#allocation2 + $0x90] sm:$0xff]  ;;  %v60_v32 = vld [vmem:[#allocation2 + $0x88] sm:$0xff] }
  0x27   :  { %2195 = vmatpush3.msra.mxu0 %v54_v6  ;;  %2230 = vmatpush3.msra.mxu1 %v70_v12  ;;  %v59_v33 = vld [vmem:[#allocation2 + $0x80] sm:$0xff]  ;;  %v284_v34 = vld [vmem:[#allocation4 + $0x1c8] sm:$0xff]  ;;  %v283_v36 = vld [vmem:[#allocation4 + $0x1c0] sm:$0xff] }
  0x28   :  { %2196 = vmatprep.subr.mxu0 %v2315_v0  ;;  %2231 = vmatprep.subr.mxu1 %v2315_v0  ;;  %v286_v35 = vld [vmem:[#allocation4 + $0x1d8] sm:$0xff]  ;;  %v276_v37 = vld [vmem:[#allocation4 + $0x188] sm:$0xff]  ;;  %v275_v38 = vld [vmem:[#allocation4 + $0x180] sm:$0xff] }
  0x29   :  { %2197 = vmatpush3.msra.mxu0 %v53_v9  ;;  %2232 = vmatpush3.msra.mxu1 %v69_v14  ;;  %v75_v42 = vld [vmem:[#allocation2 + $0x100] sm:$0xff]  ;;  %v285_v48 = vld [vmem:[#allocation4 + $0x1d0] sm:$0xff]  ;;  %v268_v52 = vld [vmem:[#allocation4 + $0x148] sm:$0xff] }
  0x2a   :  { %2198 = vmatprep.subr.mxu0 %v2315_v0  ;;  %2233 = vmatprep.subr.mxu1 %v2315_v0  ;;  %v79_v43 = vrot.slane %v75_v42, %v78_v41  ;;  %v278_v50 = vld [vmem:[#allocation4 + $0x198] sm:$0xff]  ;;  %v277_v51 = vld [vmem:[#allocation4 + $0x190] sm:$0xff]  ;;  %v267_v54 = vld [vmem:[#allocation4 + $0x140] sm:$0xff]  ;;  %v156_v63 = vrot.slane %v75_v42, %v155_v62 }
  0x2b   :  { %2199 = vmatpush3.msra.mxu0 %v52_v11  ;;  %2234 = vmatpush3.msra.mxu1 %v68_v16  ;;  %v270_v53 = vld [vmem:[#allocation4 + $0x158] sm:$0xff]  ;;  %v269_v55 = vld [vmem:[#allocation4 + $0x150] sm:$0xff]  ;;  %v260_v56 = vld [vmem:[#allocation4 + $0x108] sm:$0xff] }
  0x2c   :  { %2200 = vmatprep.subr.mxu0 %v2315_v0  ;;  %2235 = vmatprep.subr.mxu1 %v2315_v0  ;;  %v262_v57 = vld [vmem:[#allocation4 + $0x118] sm:$0xff]  ;;  %v259_v58 = vld [vmem:[#allocation4 + $0x100] sm:$0xff]  ;;  %v261_v59 = vld [vmem:[#allocation4 + $0x110] sm:$0xff] }
  0x2d   :  { %2201 = vmatpush3.msra.mxu0 %v51_v13  ;;  %2236 = vmatpush3.msra.mxu1 %v67_v18  ;;  %v288_v60 = vld [vmem:[#allocation4 + $0x1e8] sm:$0xff]  ;;  %v290_v61 = vld [vmem:[#allocation4 + $0x1f8] sm:$0xff]  ;;  %v287_v5 = vld [vmem:[#allocation4 + $0x1e0] sm:$0xff] }
  0x2e   :  { %2202 = vmatprep.subr.mxu0 %v2315_v0  ;;  %2237 = vmatprep.subr.mxu1 %v2315_v0  ;;  %v289_v6 = vld [vmem:[#allocation4 + $0x1f0] sm:$0xff]  ;;  %v280_v7 = vld [vmem:[#allocation4 + $0x1a8] sm:$0xff]  ;;  %v282_v8 = vld [vmem:[#allocation4 + $0x1b8] sm:$0xff] }
  0x2f   :  { %2203 = vmatpush3.msra.mxu0 %v50_v15  ;;  %2238 = vmatpush3.msra.mxu1 %v66_v20  ;;  %v279_v9 = vld [vmem:[#allocation4 + $0x1a0] sm:$0xff]  ;;  %v281_v10 = vld [vmem:[#allocation4 + $0x1b0] sm:$0xff]  ;;  %v272_v11 = vld [vmem:[#allocation4 + $0x168] sm:$0xff] }
  0x30   :  { %2204 = vmatprep.subr.mxu0 %v2315_v0  ;;  %2239 = vmatprep.subr.mxu1 %v2315_v0  ;;  %v274_v12 = vld [vmem:[#allocation4 + $0x178] sm:$0xff]  ;;  %v271_v13 = vld [vmem:[#allocation4 + $0x160] sm:$0xff]  ;;  %v273_v14 = vld [vmem:[#allocation4 + $0x170] sm:$0xff] }
  0x31   :  { %2205 = vmatpush3.msra.mxu0 %v49_v17  ;;  %2240 = vmatpush3.msra.mxu1 %v65_v22  ;;  %v264_v15 = vld [vmem:[#allocation4 + $0x128] sm:$0xff]  ;;  %v266_v16 = vld [vmem:[#allocation4 + $0x138] sm:$0xff]  ;;  %v263_v17 = vld [vmem:[#allocation4 + $0x120] sm:$0xff] }
  0x32   :  { %2206 = vmatprep.subr.mxu0 %v2315_v0  ;;  %2241 = vmatprep.subr.mxu1 %v2315_v0  ;;  %v265_v18 = vld [vmem:[#allocation4 + $0x130] sm:$0xff]  ;;  %v254_v20 = vld [vmem:[#allocation4 + $0xd8] sm:$0xff]  ;;  %v248_v41 = vld [vmem:[#allocation4 + $0xa8] sm:$0xff] }
  0x33   :  { %2207 = vmatpush3.msra.mxu0 %v48_v19  ;;  %2242 = vmatpush3.msra.mxu1 %v64_v24  ;;  %v252_v19 = vld [vmem:[#allocation4 + $0xc8] sm:$0xff]  ;;  %v253_v22 = vld [vmem:[#allocation4 + $0xd0] sm:$0xff]  ;;  %v246_v24 = vld [vmem:[#allocation4 + $0x98] sm:$0xff] }
  0x34   :  { %2208 = vmatprep.subr.mxu0 %v2315_v0  ;;  %2243 = vmatprep.subr.mxu1 %v2315_v0  ;;  %v257_v39 = vld [vmem:[#allocation4 + $0xf0] sm:$0xff]  ;;  %v250_v42 = vld [vmem:[#allocation4 + $0xb8] sm:$0xff] }
  0x35   :  { %2209 = vmatpush3.msra.mxu0 %v47_v21  ;;  %2244 = vmatpush3.msra.mxu1 %v63_v26  ;;  %v251_v21 = vld [vmem:[#allocation4 + $0xc0] sm:$0xff]  ;;  %v245_v26 = vld [vmem:[#allocation4 + $0x90] sm:$0xff]  ;;  %v334_v62 = vld [vmem:[#allocation4 + $0x358] sm:$0xff] }
  0x36   :  { %2210 = vmatprep.subr.mxu0 %v2315_v0  ;;  %2245 = vmatprep.subr.mxu1 %v2315_v0 }
  0x37   :  { %2211 = vmatpush3.msra.mxu0 %v46_v23  ;;  %2246 = vmatpush3.msra.mxu1 %v62_v28  ;;  %v244_v23 = vld [vmem:[#allocation4 + $0x88] sm:$0xff]  ;;  %v238_v28 = vld [vmem:[#allocation4 + $0x58] sm:$0xff] }
  0x38   :  { %2212 = vmatprep.subr.mxu0 %v2315_v0  ;;  %2247 = vmatprep.subr.mxu1 %v2315_v0 }
  0x39   :  { %2213 = vmatpush3.msra.mxu0 %v45_v25  ;;  %2248 = vmatpush3.msra.mxu1 %v61_v31  ;;  %v243_v25 = vld [vmem:[#allocation4 + $0x80] sm:$0xff]  ;;  %v237_v31 = vld [vmem:[#allocation4 + $0x50] sm:$0xff] }
  0x3a   :  { %2214 = vmatprep.subr.mxu0 %v2315_v0  ;;  %2249 = vmatprep.subr.mxu1 %v2315_v0 }
  0x3b   :  { %2215 = vmatpush3.msra.mxu0 %v44_v27  ;;  %2250 = vmatpush3.msra.mxu1 %v60_v32  ;;  %v236_v27 = vld [vmem:[#allocation4 + $0x48] sm:$0xff] }
  0x3c   :  { %2216 = vmatprep.subr.mxu0 %v2315_v0  ;;  %2251 = vmatprep.subr.mxu1 %v2315_v0  ;;  %v228_v32 = vld [vmem:[#allocation4 + $0x8] sm:$0xff] }
  0x3d   :  { %2217 = vmatpush3.msra.mxu0 %v43_v29  ;;  %2252 = vmatpush3.msra.mxu1 %v59_v33  ;;  %v235_v29 = vld [vmem:[#allocation4 + $0x40] sm:$0xff]  ;;  %v230_v33 = vld [vmem:[#allocation4 + $0x18] sm:$0xff] }
  0x3e   :  { %2219 = vmatmul.mubr.f32.vlgmr.msra.gmra.mxu0 %v2379_v30  ;;  %392 = vmatprep.subr.mxu0 %v284_v34  ;;  %v227_v34 = vld [vmem:[#allocation4] sm:$0xff] }
  0x3f   :  { %432 = vmatprep.mubr.f32.mxu0 %v2315_v0  ;;  %463 = vmatprep.subr.mxu1 %v286_v35  ;;  %v229_v35 = vld [vmem:[#allocation4 + $0x10] sm:$0xff] }
  0x40   :  { %393 = vmatpush1.msra.mxu0 %v283_v36  ;;  %v256_v36 = vld [vmem:[#allocation4 + $0xe8] sm:$0xff] }
  0x41   :  { %394 = vmatprep.subr.mxu0 %v276_v37  ;;  %v258_v37 = vld [vmem:[#allocation4 + $0xf8] sm:$0xff] }
  0x42   :  { %395 = vmatpush1.msra.mxu0 %v275_v38  ;;  %v255_v38 = vld [vmem:[#allocation4 + $0xe0] sm:$0xff] }
  0x43   :  { %396 = vmatprep.subr.mxu0 %v268_v52  ;;  %v233_v52 = vld [vmem:[#allocation4 + $0x30] sm:$0xff] }
  0x44   :  { %397 = vmatpush1.msra.mxu0 %v267_v54  ;;  %v350_v54 = vld [vmem:[#allocation4 + $0x3d8] sm:$0xff] }
  0x45   :  { %398 = vmatprep.subr.mxu0 %v260_v56  ;;  %v349_v56 = vld [vmem:[#allocation4 + $0x3d0] sm:$0xff] }
  0x46   :  { %399 = vmatpush1.msra.mxu0 %v259_v58  ;;  %v342_v58 = vld [vmem:[#allocation4 + $0x398] sm:$0xff] }
  0x47   :  { %534 = vmatprep.subr.mxu0 %v288_v60  ;;  %v341_v60 = vld [vmem:[#allocation4 + $0x390] sm:$0xff] }
  0xfe   :  { %v146_v44 = vpop.f32.mrf.mxu0 }
  0xff   :  { %v147_v45 = vadd.f32 %v146_v44, %v79_v43  ;;  %v247_v43 = vld [vmem:[#allocation4 + $0xa0] sm:$0xff]  ;;  %v249_v44 = vld [vmem:[#allocation4 + $0xb0] sm:$0xff] }
 0x100   :  { %v2220_v46 = vpop.f32.mrf.mxu0 }
 0x101   :  { %v151_v47 = vmul.f32 0.01, %v147_v45  ;;  %vm150_vm1 = vcmp.ge.f32.partialorder %v147_v45, 0.0  ;;  %v242_v46 = vld [vmem:[#allocation4 + $0x78] sm:$0xff] }
 0x103   :  { %v152_v49 = vsel %vm150_vm1, %v147_v45, %v151_v47  ;;  %v240_v45 = vld [vmem:[#allocation4 + $0x68] sm:$0xff]  ;;  %v239_v47 = vld [vmem:[#allocation4 + $0x60] sm:$0xff] }
 0x104   :  { %2254 = vmatmul.mubr.f32.vlgmr.msra.gmra.mxu1 %v152_v49  ;;  %v232_v49 = vld [vmem:[#allocation4 + $0x28] sm:$0xff] }
 0x105   :  { %464 = vmatpush1.msra.mxu1 %v285_v48  ;;  %503 = vmatprep.mubr.f32.mxu1 %v2315_v0  ;;  %v241_v48 = vld [vmem:[#allocation4 + $0x70] sm:$0xff] }
 0x106   :  { %465 = vmatprep.subr.mxu1 %v278_v50  ;;  %v234_v50 = vld [vmem:[#allocation4 + $0x38] sm:$0xff] }
 0x107   :  { %466 = vmatpush1.msra.mxu1 %v277_v51  ;;  %v231_v51 = vld [vmem:[#allocation4 + $0x20] sm:$0xff] }
 0x108   :  { %467 = vmatprep.subr.mxu1 %v270_v53  ;;  %v348_v53 = vld [vmem:[#allocation4 + $0x3c8] sm:$0xff] }
 0x109   :  { %468 = vmatpush1.msra.mxu1 %v269_v55  ;;  %v347_v55 = vld [vmem:[#allocation4 + $0x3c0] sm:$0xff] }
 0x10a   :  { %469 = vmatprep.subr.mxu1 %v262_v57  ;;  %v340_v57 = vld [vmem:[#allocation4 + $0x388] sm:$0xff] }
 0x10b   :  { %470 = vmatpush1.msra.mxu1 %v261_v59  ;;  %v339_v59 = vld [vmem:[#allocation4 + $0x380] sm:$0xff] }
 0x10c   :  { %605 = vmatprep.subr.mxu1 %v290_v61  ;;  %v332_v61 = vld [vmem:[#allocation4 + $0x348] sm:$0xff] }
 0x1c4   :  { %v223_v1 = vpop.f32.mrf.mxu1 }
 0x1c5   :  { %v2393_v2 = vadd.f32 %v223_v1, %v156_v63  ;;  %v331_v63 = vld [vmem:[#allocation4 + $0x340] sm:$0xff]  ;;  %v333_v1 = vld [vmem:[#allocation4 + $0x350] sm:$0xff] }
 0x1c6   :  { %v2255_v3 = vpop.f32.mrf.mxu1 }
 0x1c7   :  { %1988 = vst [vmem:[%s2491_s3 + $0x2] sm:$0x3] %v2393_v2  ;;  %v364_v4 = vrot.slane %v2393_v2, 1  ;;  %v324_v3 = vld [vmem:[#allocation4 + $0x308] sm:$0xff] }
 0x1c9   :  { %1996 = vmatmul.mubr.msk.f32.vlgmr.msra.gmra.mxu0 %vm365_vm2, %v364_v4  ;;  %1997 = vmatmul.mubr.msk.f32.vlgmr.msra.gmra.mxu1 %vm365_vm2, %v364_v4 }
 0x1ca   :  { %535 = vmatpush1.msra.mxu0 %v287_v5  ;;  %606 = vmatpush1.msra.mxu1 %v289_v6  ;;  %v939_v5 = vrot.slane %v2379_v30, 2  ;;  %v323_v6 = vld [vmem:[#allocation4 + $0x300] sm:$0xff]  ;;  %v344_v30 = vld [vmem:[#allocation4 + $0x3a8] sm:$0xff] }
 0x1cb   :  { %536 = vmatprep.subr.mxu0 %v280_v7  ;;  %607 = vmatprep.subr.mxu1 %v282_v8  ;;  %v325_v7 = vld [vmem:[#allocation4 + $0x310] sm:$0xff]  ;;  %v352_v8 = vld [vmem:[#allocation4 + $0x3e8] sm:$0xff] }
 0x1cc   :  { %537 = vmatpush1.msra.mxu0 %v279_v9  ;;  %608 = vmatpush1.msra.mxu1 %v281_v10  ;;  %v354_v9 = vld [vmem:[#allocation4 + $0x3f8] sm:$0xff]  ;;  %v351_v10 = vld [vmem:[#allocation4 + $0x3e0] sm:$0xff] }
 0x1cd   :  { %538 = vmatprep.subr.mxu0 %v272_v11  ;;  %609 = vmatprep.subr.mxu1 %v274_v12  ;;  %v353_v11 = vld [vmem:[#allocation4 + $0x3f0] sm:$0xff]  ;;  %v346_v12 = vld [vmem:[#allocation4 + $0x3b8] sm:$0xff] }
 0x1ce   :  { %539 = vmatpush1.msra.mxu0 %v271_v13  ;;  %610 = vmatpush1.msra.mxu1 %v273_v14  ;;  %v343_v13 = vld [vmem:[#allocation4 + $0x3a0] sm:$0xff]  ;;  %v345_v14 = vld [vmem:[#allocation4 + $0x3b0] sm:$0xff] }
 0x1cf   :  { %540 = vmatprep.subr.mxu0 %v264_v15  ;;  %611 = vmatprep.subr.mxu1 %v266_v16  ;;  %v336_v15 = vld [vmem:[#allocation4 + $0x368] sm:$0xff]  ;;  %v338_v16 = vld [vmem:[#allocation4 + $0x378] sm:$0xff] }
 0x1d0   :  { %541 = vmatpush1.msra.mxu0 %v263_v17  ;;  %574 = vmatprep.mubr.f32.mxu0 %v2315_v0  ;;  %v335_v17 = vld [vmem:[#allocation4 + $0x360] sm:$0xff] }
 0x1d1   :  { %612 = vmatpush1.msra.mxu1 %v265_v18  ;;  %645 = vmatprep.mubr.f32.mxu1 %v2315_v0  ;;  %v337_v18 = vld [vmem:[#allocation4 + $0x370] sm:$0xff] }
 0x1d2   :  { %1998 = vmatmul.mubr.msk.f32.vlgmr.msra.gmra.mxu0 %vm365_vm2, %v364_v4  ;;  %1999 = vmatmul.mubr.msk.f32.vlgmr.msra.gmra.mxu1 %vm365_vm2, %v364_v4  ;;  %v326_v4 = vld [vmem:[#allocation4 + $0x318] sm:$0xff] }
 0x1d3   :  { %678 = vmatprep.subr.mxu0 %v252_v19  ;;  %749 = vmatprep.subr.mxu1 %v254_v20  ;;  %v328_v19 = vld [vmem:[#allocation4 + $0x328] sm:$0xff]  ;;  %v330_v20 = vld [vmem:[#allocation4 + $0x338] sm:$0xff] }
 0x1d4   :  { %679 = vmatpush1.msra.mxu0 %v251_v21  ;;  %750 = vmatpush1.msra.mxu1 %v253_v22  ;;  %v327_v21 = vld [vmem:[#allocation4 + $0x320] sm:$0xff]  ;;  %v329_v22 = vld [vmem:[#allocation4 + $0x330] sm:$0xff] }
 0x1d5   :  { %680 = vmatprep.subr.mxu0 %v244_v23  ;;  %751 = vmatprep.subr.mxu1 %v246_v24  ;;  %v316_v23 = vld [vmem:[#allocation4 + $0x2c8] sm:$0xff]  ;;  %v318_v24 = vld [vmem:[#allocation4 + $0x2d8] sm:$0xff] }
 0x1d6   :  { %681 = vmatpush1.msra.mxu0 %v243_v25  ;;  %752 = vmatpush1.msra.mxu1 %v245_v26  ;;  %v315_v25 = vld [vmem:[#allocation4 + $0x2c0] sm:$0xff]  ;;  %v317_v26 = vld [vmem:[#allocation4 + $0x2d0] sm:$0xff] }
 0x1d7   :  { %682 = vmatprep.subr.mxu0 %v236_v27  ;;  %753 = vmatprep.subr.mxu1 %v238_v28  ;;  %v308_v27 = vld [vmem:[#allocation4 + $0x288] sm:$0xff]  ;;  %v310_v28 = vld [vmem:[#allocation4 + $0x298] sm:$0xff] }
 0x1d8   :  { %683 = vmatpush1.msra.mxu0 %v235_v29  ;;  %754 = vmatpush1.msra.mxu1 %v237_v31  ;;  %v307_v29 = vld [vmem:[#allocation4 + $0x280] sm:$0xff]  ;;  %v309_v31 = vld [vmem:[#allocation4 + $0x290] sm:$0xff] }
 0x1d9   :  { %684 = vmatprep.subr.mxu0 %v228_v32  ;;  %755 = vmatprep.subr.mxu1 %v230_v33  ;;  %v300_v32 = vld [vmem:[#allocation4 + $0x248] sm:$0xff]  ;;  %v302_v33 = vld [vmem:[#allocation4 + $0x258] sm:$0xff] }
 0x1da   :  { %685 = vmatpush1.msra.mxu0 %v227_v34  ;;  %718 = vmatprep.mubr.f32.mxu0 %v2315_v0  ;;  %v299_v34 = vld [vmem:[#allocation4 + $0x240] sm:$0xff] }
 0x1db   :  { %756 = vmatpush1.msra.mxu1 %v229_v35  ;;  %789 = vmatprep.mubr.f32.mxu1 %v2315_v0  ;;  %v301_v35 = vld [vmem:[#allocation4 + $0x250] sm:$0xff] }
 0x1dc   :  { %2000 = vmatmul.mubr.msk.f32.vlgmr.msra.gmra.mxu0 %vm365_vm2, %v2393_v2  ;;  %2001 = vmatmul.mubr.msk.f32.vlgmr.msra.gmra.mxu1 %vm365_vm2, %v2393_v2 }
 0x1dd   :  { %820 = vmatprep.subr.mxu0 %v256_v36  ;;  %891 = vmatprep.subr.mxu1 %v258_v37  ;;  %v292_v36 = vld [vmem:[#allocation4 + $0x208] sm:$0xff]  ;;  %v294_v37 = vld [vmem:[#allocation4 + $0x218] sm:$0xff] }
 0x1de   :  { %821 = vmatpush1.msra.mxu0 %v255_v38  ;;  %892 = vmatpush1.msra.mxu1 %v257_v39  ;;  %v291_v38 = vld [vmem:[#allocation4 + $0x200] sm:$0xff]  ;;  %v293_v39 = vld [vmem:[#allocation4 + $0x210] sm:$0xff] }
 0x1df   :  { %822 = vmatprep.subr.mxu0 %v248_v41  ;;  %893 = vmatprep.subr.mxu1 %v250_v42  ;;  %v320_v41 = vld [vmem:[#allocation4 + $0x2e8] sm:$0xff]  ;;  %v322_v42 = vld [vmem:[#allocation4 + $0x2f8] sm:$0xff] }
 0x1e0   :  { %823 = vmatpush1.msra.mxu0 %v247_v43  ;;  %894 = vmatpush1.msra.mxu1 %v249_v44  ;;  %v319_v43 = vld [vmem:[#allocation4 + $0x2e0] sm:$0xff]  ;;  %v321_v44 = vld [vmem:[#allocation4 + $0x2f0] sm:$0xff] }
 0x1e1   :  { %824 = vmatprep.subr.mxu0 %v240_v45  ;;  %895 = vmatprep.subr.mxu1 %v242_v46  ;;  %v312_v45 = vld [vmem:[#allocation4 + $0x2a8] sm:$0xff]  ;;  %v314_v46 = vld [vmem:[#allocation4 + $0x2b8] sm:$0xff] }
 0x1e2   :  { %825 = vmatpush1.msra.mxu0 %v239_v47  ;;  %896 = vmatpush1.msra.mxu1 %v241_v48  ;;  %v311_v47 = vld [vmem:[#allocation4 + $0x2a0] sm:$0xff]  ;;  %v313_v48 = vld [vmem:[#allocation4 + $0x2b0] sm:$0xff] }
 0x1e3   :  { %826 = vmatprep.subr.mxu0 %v232_v49  ;;  %897 = vmatprep.subr.mxu1 %v234_v50  ;;  %v304_v49 = vld [vmem:[#allocation4 + $0x268] sm:$0xff]  ;;  %v306_v50 = vld [vmem:[#allocation4 + $0x278] sm:$0xff] }
 0x1e4   :  { %827 = vmatpush1.msra.mxu0 %v231_v51  ;;  %860 = vmatprep.mubr.f32.mxu0 %v2315_v0  ;;  %v303_v51 = vld [vmem:[#allocation4 + $0x260] sm:$0xff] }
 0x1e5   :  { %898 = vmatpush1.msra.mxu1 %v233_v52  ;;  %931 = vmatprep.mubr.f32.mxu1 %v2315_v0  ;;  %v305_v52 = vld [vmem:[#allocation4 + $0x270] sm:$0xff] }
 0x1e6   :  { %2002 = vmatmul.mubr.msk.f32.vlgmr.msra.gmra.mxu0 %vm365_vm2, %v2393_v2  ;;  %2003 = vmatmul.mubr.msk.f32.vlgmr.msra.gmra.mxu1 %vm365_vm2, %v2393_v2 }
 0x1e7   :  { %966 = vmatprep.subr.mxu0 %v348_v53  ;;  %1037 = vmatprep.subr.mxu1 %v350_v54  ;;  %v296_v53 = vld [vmem:[#allocation4 + $0x228] sm:$0xff]  ;;  %v298_v54 = vld [vmem:[#allocation4 + $0x238] sm:$0xff] }
 0x1e8   :  { %967 = vmatpush1.msra.mxu0 %v347_v55  ;;  %1038 = vmatpush1.msra.mxu1 %v349_v56  ;;  %v295_v55 = vld [vmem:[#allocation4 + $0x220] sm:$0xff]  ;;  %v297_v56 = vld [vmem:[#allocation4 + $0x230] sm:$0xff] }
 0x1e9   :  { %968 = vmatprep.subr.mxu0 %v340_v57  ;;  %1039 = vmatprep.subr.mxu1 %v342_v58  ;;  %v1606_v57 = vld [vmem:[#allocation2 + $0x200] sm:$0xff] }
 0x1ea   :  { %969 = vmatpush1.msra.mxu0 %v339_v59  ;;  %1040 = vmatpush1.msra.mxu1 %v341_v60  ;;  %v1638_v58 = vld [vmem:[#allocation2 + $0x300] sm:$0xff] }
 0x1eb   :  { %970 = vmatprep.subr.mxu0 %v332_v61  ;;  %1041 = vmatprep.subr.mxu1 %v334_v62  ;;  %v1590_v59 = vld [vmem:[#allocation2 + $0x180] sm:$0xff]  ;;  %v1605_v61 = vld [vmem:[#allocation2 + $0x1f8] sm:$0xff] }
 0x1ec   :  { %971 = vmatpush1.msra.mxu0 %v331_v63  ;;  %1042 = vmatpush1.msra.mxu1 %v333_v1  ;;  %v1622_v60 = vld [vmem:[#allocation2 + $0x280] sm:$0xff]  ;;  %v1637_v62 = vld [vmem:[#allocation2 + $0x2f8] sm:$0xff]  ;;  %v1604_v1 = vld [vmem:[#allocation2 + $0x1f0] sm:$0xff] }
 0x1ed   :  { %972 = vmatprep.subr.mxu0 %v324_v3  ;;  %1043 = vmatprep.subr.mxu1 %v326_v4  ;;  %v1589_v63 = vld [vmem:[#allocation2 + $0x178] sm:$0xff]  ;;  %v1636_v3 = vld [vmem:[#allocation2 + $0x2f0] sm:$0xff] }
 0x1ee   :  { %973 = vmatpush1.msra.mxu0 %v323_v6  ;;  %1006 = vmatprep.mubr.f32.mxu0 %v2315_v0  ;;  %v1588_v4 = vld [vmem:[#allocation2 + $0x170] sm:$0xff]  ;;  %v1635_v6 = vld [vmem:[#allocation2 + $0x2e8] sm:$0xff] }
 0x1ef   :  { %1044 = vmatpush1.msra.mxu1 %v325_v7  ;;  %2004 = vmatmul.mubr.msk.f32.vlgmr.msra.gmra.mxu0 %vm365_vm2, %v939_v5  ;;  %v1587_v7 = vld [vmem:[#allocation2 + $0x168] sm:$0xff] }
 0x1f0   :  { %1077 = vmatprep.mubr.f32.mxu1 %v2315_v0  ;;  %1108 = vmatprep.subr.mxu0 %v352_v8  ;;  %v1619_v8 = vld [vmem:[#allocation2 + $0x268] sm:$0xff] }
 0x1f1   :  { %1179 = vmatprep.subr.mxu1 %v354_v9  ;;  %2005 = vmatmul.mubr.msk.f32.vlgmr.msra.gmra.mxu1 %vm365_vm2, %v939_v5  ;;  %v1602_v9 = vld [vmem:[#allocation2 + $0x1e0] sm:$0xff] }
 0x1f2   :  { %1109 = vmatpush1.msra.mxu0 %v351_v10  ;;  %1180 = vmatpush1.msra.mxu1 %v353_v11  ;;  %v1634_v10 = vld [vmem:[#allocation2 + $0x2e0] sm:$0xff] }
 0x1f3   :  { %1110 = vmatprep.subr.mxu0 %v344_v30  ;;  %1181 = vmatprep.subr.mxu1 %v346_v12  ;;  %v1586_v11 = vld [vmem:[#allocation2 + $0x160] sm:$0xff]  ;;  %v1601_v12 = vld [vmem:[#allocation2 + $0x1d8] sm:$0xff] }
 0x1f4   :  { %1111 = vmatpush1.msra.mxu0 %v343_v13  ;;  %1182 = vmatpush1.msra.mxu1 %v345_v14  ;;  %v1618_v30 = vld [vmem:[#allocation2 + $0x260] sm:$0xff]  ;;  %v1633_v13 = vld [vmem:[#allocation2 + $0x2d8] sm:$0xff] }
 0x1f5   :  { %1112 = vmatprep.subr.mxu0 %v336_v15  ;;  %1183 = vmatprep.subr.mxu1 %v338_v16  ;;  %v1585_v14 = vld [vmem:[#allocation2 + $0x158] sm:$0xff]  ;;  %v1600_v16 = vld [vmem:[#allocation2 + $0x1d0] sm:$0xff] }
 0x1f6   :  { %1113 = vmatpush1.msra.mxu0 %v335_v17  ;;  %1184 = vmatpush1.msra.mxu1 %v337_v18  ;;  %v1617_v15 = vld [vmem:[#allocation2 + $0x258] sm:$0xff]  ;;  %v1632_v17 = vld [vmem:[#allocation2 + $0x2d0] sm:$0xff] }
 0x1f7   :  { %1114 = vmatprep.subr.mxu0 %v328_v19  ;;  %1185 = vmatprep.subr.mxu1 %v330_v20  ;;  %v1584_v18 = vld [vmem:[#allocation2 + $0x150] sm:$0xff]  ;;  %v1599_v20 = vld [vmem:[#allocation2 + $0x1c8] sm:$0xff] }
 0x1f8   :  { %1115 = vmatpush1.msra.mxu0 %v327_v21  ;;  %1148 = vmatprep.mubr.f32.mxu0 %v2315_v0  ;;  %v1616_v19 = vld [vmem:[#allocation2 + $0x250] sm:$0xff]  ;;  %v1631_v21 = vld [vmem:[#allocation2 + $0x2c8] sm:$0xff] }
 0x1f9   :  { %1186 = vmatpush1.msra.mxu1 %v329_v22  ;;  %2006 = vmatmul.mubr.msk.f32.vlgmr.msra.gmra.mxu0 %vm365_vm2, %v939_v5  ;;  %v1583_v22 = vld [vmem:[#allocation2 + $0x148] sm:$0xff] }
 0x1fa   :  { %1219 = vmatprep.mubr.f32.mxu1 %v2315_v0  ;;  %1250 = vmatprep.subr.mxu0 %v316_v23  ;;  %v1615_v23 = vld [vmem:[#allocation2 + $0x248] sm:$0xff] }
 0x1fb   :  { %1321 = vmatprep.subr.mxu1 %v318_v24  ;;  %2007 = vmatmul.mubr.msk.f32.vlgmr.msra.gmra.mxu1 %vm365_vm2, %v939_v5  ;;  %v1603_v5 = vld [vmem:[#allocation2 + $0x1e8] sm:$0xff]  ;;  %v1598_v24 = vld [vmem:[#allocation2 + $0x1c0] sm:$0xff] }
 0x1fc   :  { %1251 = vmatpush1.msra.mxu0 %v315_v25  ;;  %1322 = vmatpush1.msra.mxu1 %v317_v26  ;;  %v1630_v25 = vld [vmem:[#allocation2 + $0x2c0] sm:$0xff] }
 0x1fd   :  { %1252 = vmatprep.subr.mxu0 %v308_v27  ;;  %1323 = vmatprep.subr.mxu1 %v310_v28  ;;  %v1582_v26 = vld [vmem:[#allocation2 + $0x140] sm:$0xff]  ;;  %v1597_v28 = vld [vmem:[#allocation2 + $0x1b8] sm:$0xff] }
 0x1fe   :  { %1253 = vmatpush1.msra.mxu0 %v307_v29  ;;  %1324 = vmatpush1.msra.mxu1 %v309_v31  ;;  %v1614_v27 = vld [vmem:[#allocation2 + $0x240] sm:$0xff]  ;;  %v1629_v29 = vld [vmem:[#allocation2 + $0x2b8] sm:$0xff] }
 0x1ff   :  { %1254 = vmatprep.subr.mxu0 %v300_v32  ;;  %1325 = vmatprep.subr.mxu1 %v302_v33  ;;  %v1581_v31 = vld [vmem:[#allocation2 + $0x138] sm:$0xff]  ;;  %v1596_v33 = vld [vmem:[#allocation2 + $0x1b0] sm:$0xff] }
 0x200   :  { %1255 = vmatpush1.msra.mxu0 %v299_v34  ;;  %1326 = vmatpush1.msra.mxu1 %v301_v35  ;;  %v1613_v32 = vld [vmem:[#allocation2 + $0x238] sm:$0xff]  ;;  %v1628_v34 = vld [vmem:[#allocation2 + $0x2b0] sm:$0xff] }
 0x201   :  { %1256 = vmatprep.subr.mxu0 %v292_v36  ;;  %1327 = vmatprep.subr.mxu1 %v294_v37  ;;  %v1580_v35 = vld [vmem:[#allocation2 + $0x130] sm:$0xff]  ;;  %v1595_v37 = vld [vmem:[#allocation2 + $0x1a8] sm:$0xff] }
 0x202   :  { %1257 = vmatpush1.msra.mxu0 %v291_v38  ;;  %1290 = vmatprep.mubr.f32.mxu0 %v2315_v0  ;;  %v1612_v36 = vld [vmem:[#allocation2 + $0x230] sm:$0xff]  ;;  %v1627_v38 = vld [vmem:[#allocation2 + $0x2a8] sm:$0xff] }
 0x203   :  { %1328 = vmatpush1.msra.mxu1 %v293_v39  ;;  %1361 = vmatprep.mubr.f32.mxu1 %v2315_v0  ;;  %v1579_v39 = vld [vmem:[#allocation2 + $0x128] sm:$0xff] }
 0x204   :  { %2008 = vmatmul.mubr.msk.f32.vlgmr.msra.gmra.mxu0 %vm365_vm2, %v2393_v2  ;;  %2009 = vmatmul.mubr.msk.f32.vlgmr.msra.gmra.mxu1 %vm365_vm2, %v2393_v2 }
 0x205   :  { %1392 = vmatprep.subr.mxu0 %v320_v41  ;;  %1463 = vmatprep.subr.mxu1 %v322_v42  ;;  %v1611_v41 = vld [vmem:[#allocation2 + $0x228] sm:$0xff]  ;;  %v1594_v42 = vld [vmem:[#allocation2 + $0x1a0] sm:$0xff] }
 0x206   :  { %1393 = vmatpush1.msra.mxu0 %v319_v43  ;;  %1464 = vmatpush1.msra.mxu1 %v321_v44  ;;  %v1626_v43 = vld [vmem:[#allocation2 + $0x2a0] sm:$0xff] }
 0x207   :  { %1394 = vmatprep.subr.mxu0 %v312_v45  ;;  %1465 = vmatprep.subr.mxu1 %v314_v46  ;;  %v1578_v44 = vld [vmem:[#allocation2 + $0x120] sm:$0xff]  ;;  %v1593_v46 = vld [vmem:[#allocation2 + $0x198] sm:$0xff] }
 0x208   :  { %1395 = vmatpush1.msra.mxu0 %v311_v47  ;;  %1466 = vmatpush1.msra.mxu1 %v313_v48  ;;  %v1610_v45 = vld [vmem:[#allocation2 + $0x220] sm:$0xff]  ;;  %v1625_v47 = vld [vmem:[#allocation2 + $0x298] sm:$0xff] }
 0x209   :  { %1396 = vmatprep.subr.mxu0 %v304_v49  ;;  %1467 = vmatprep.subr.mxu1 %v306_v50  ;;  %v1577_v48 = vld [vmem:[#allocation2 + $0x118] sm:$0xff]  ;;  %v1592_v50 = vld [vmem:[#allocation2 + $0x190] sm:$0xff] }
 0x20a   :  { %1397 = vmatpush1.msra.mxu0 %v303_v51  ;;  %1468 = vmatpush1.msra.mxu1 %v305_v52  ;;  %v1609_v49 = vld [vmem:[#allocation2 + $0x218] sm:$0xff]  ;;  %v1624_v51 = vld [vmem:[#allocation2 + $0x290] sm:$0xff] }
 0x20b   :  { %1398 = vmatprep.subr.mxu0 %v296_v53  ;;  %1469 = vmatprep.subr.mxu1 %v298_v54  ;;  %v1576_v52 = vld [vmem:[#allocation2 + $0x110] sm:$0xff]  ;;  %v1591_v54 = vld [vmem:[#allocation2 + $0x188] sm:$0xff] }
 0x20c   :  { %1399 = vmatpush1.msra.mxu0 %v295_v55  ;;  %1432 = vmatprep.mubr.f32.mxu0 %v2315_v0  ;;  %v1608_v53 = vld [vmem:[#allocation2 + $0x210] sm:$0xff]  ;;  %v1623_v55 = vld [vmem:[#allocation2 + $0x288] sm:$0xff] }
 0x20d   :  { %1470 = vmatpush1.msra.mxu1 %v297_v56  ;;  %1503 = vmatprep.mubr.f32.mxu1 %v2315_v0  ;;  %v1621_v0 = vld [vmem:[#allocation2 + $0x278] sm:$0xff]  ;;  %v1575_v56 = vld [vmem:[#allocation2 + $0x108] sm:$0xff] }
 0x20e   :  { %2010 = vmatmul.mubr.msk.f32.vlgmr.msra.gmra.mxu0 %vm365_vm2, %v2393_v2  ;;  %2011 = vmatmul.mubr.msk.f32.vlgmr.msra.gmra.mxu1 %vm365_vm2, %v2393_v2  ;;  %v1620_v2 = vld [vmem:[#allocation2 + $0x270] sm:$0xff] }
 0x20f   :  { %2046 = vmatprep.subr.mxu0 %v1606_v57  ;;  %2081 = vmatprep.subr.mxu1 %v1638_v58  ;;  %v1607_v57 = vld [vmem:[#allocation2 + $0x208] sm:$0xff]  ;;  %v1670_v58 = vld [vmem:[#allocation2 + $0x400] sm:$0xff] }
 0x210   :  { %2047 = vmatpush3.msra.mxu0 %v1590_v59  ;;  %2082 = vmatpush3.msra.mxu1 %v1622_v60  ;;  %v1702_v59 = vld [vmem:[#allocation2 + $0x500] sm:$0xff] }
 0x211   :  { %2048 = vmatprep.subr.mxu0 %v1605_v61  ;;  %2083 = vmatprep.subr.mxu1 %v1637_v62 }
 0x212   :  { %2049 = vmatpush3.msra.mxu0 %v1589_v63  ;;  %2084 = vmatpush3.msra.mxu1 %v1621_v0 }
 0x213   :  { %2050 = vmatprep.subr.mxu0 %v1604_v1  ;;  %2085 = vmatprep.subr.mxu1 %v1636_v3 }
 0x214   :  { %2051 = vmatpush3.msra.mxu0 %v1588_v4  ;;  %2086 = vmatpush3.msra.mxu1 %v1620_v2 }
 0x215   :  { %2052 = vmatprep.subr.mxu0 %v1603_v5  ;;  %2087 = vmatprep.subr.mxu1 %v1635_v6 }
 0x216   :  { %2053 = vmatpush3.msra.mxu0 %v1587_v7  ;;  %2088 = vmatpush3.msra.mxu1 %v1619_v8 }
 0x217   :  { %2054 = vmatprep.subr.mxu0 %v1602_v9  ;;  %2089 = vmatprep.subr.mxu1 %v1634_v10 }
 0x218   :  { %2055 = vmatpush3.msra.mxu0 %v1586_v11  ;;  %2090 = vmatpush3.msra.mxu1 %v1618_v30 }
 0x219   :  { %2056 = vmatprep.subr.mxu0 %v1601_v12  ;;  %2091 = vmatprep.subr.mxu1 %v1633_v13 }
 0x21a   :  { %2057 = vmatpush3.msra.mxu0 %v1585_v14  ;;  %2092 = vmatpush3.msra.mxu1 %v1617_v15 }
 0x21b   :  { %2058 = vmatprep.subr.mxu0 %v1600_v16  ;;  %2093 = vmatprep.subr.mxu1 %v1632_v17 }
 0x21c   :  { %2059 = vmatpush3.msra.mxu0 %v1584_v18  ;;  %2094 = vmatpush3.msra.mxu1 %v1616_v19 }
 0x21d   :  { %2060 = vmatprep.subr.mxu0 %v1599_v20  ;;  %2095 = vmatprep.subr.mxu1 %v1631_v21 }
 0x21e   :  { %2061 = vmatpush3.msra.mxu0 %v1583_v22  ;;  %2096 = vmatpush3.msra.mxu1 %v1615_v23 }
 0x21f   :  { %2062 = vmatprep.subr.mxu0 %v1598_v24  ;;  %2097 = vmatprep.subr.mxu1 %v1630_v25 }
 0x220   :  { %2063 = vmatpush3.msra.mxu0 %v1582_v26  ;;  %2098 = vmatpush3.msra.mxu1 %v1614_v27  ;;  %v355_v27 = vld [vmem:[#allocation4 + $0x400] sm:$0x3] }
 0x221   :  { %2064 = vmatprep.subr.mxu0 %v1597_v28  ;;  %2099 = vmatprep.subr.mxu1 %v1629_v29  ;;  %v357_v29 = vld [vmem:[#allocation4 + $0x410] sm:$0x3] }
 0x222   :  { %2065 = vmatpush3.msra.mxu0 %v1581_v31  ;;  %2100 = vmatpush3.msra.mxu1 %v1613_v32 }
 0x223   :  { %2066 = vmatprep.subr.mxu0 %v1596_v33  ;;  %2101 = vmatprep.subr.mxu1 %v1628_v34 }
 0x224   :  { %2067 = vmatpush3.msra.mxu0 %v1580_v35  ;;  %2102 = vmatpush3.msra.mxu1 %v1612_v36 }
 0x225   :  { %2068 = vmatprep.subr.mxu0 %v1595_v37  ;;  %2103 = vmatprep.subr.mxu1 %v1627_v38 }
 0x226   :  { %2069 = vmatpush3.msra.mxu0 %v1579_v39  ;;  %2104 = vmatpush3.msra.mxu1 %v1611_v41  ;;  %v356_v41 = vld [vmem:[#allocation4 + $0x408] sm:$0x3] }
 0x227   :  { %2070 = vmatprep.subr.mxu0 %v1594_v42  ;;  %2105 = vmatprep.subr.mxu1 %v1626_v43  ;;  %v358_v42 = vld [vmem:[#allocation4 + $0x418] sm:$0x3] }
 0x228   :  { %2071 = vmatpush3.msra.mxu0 %v1578_v44  ;;  %2106 = vmatpush3.msra.mxu1 %v1610_v45 }
 0x229   :  { %2072 = vmatprep.subr.mxu0 %v1593_v46  ;;  %2107 = vmatprep.subr.mxu1 %v1625_v47 }
 0x22a   :  { %2073 = vmatpush3.msra.mxu0 %v1577_v48  ;;  %2108 = vmatpush3.msra.mxu1 %v1609_v49 }
 0x22b   :  { %2074 = vmatprep.subr.mxu0 %v1592_v50  ;;  %2109 = vmatprep.subr.mxu1 %v1624_v51 }
 0x22c   :  { %2075 = vmatpush3.msra.mxu0 %v1576_v52  ;;  %2110 = vmatpush3.msra.mxu1 %v1608_v53 }
 0x22d   :  { %2076 = vmatprep.subr.mxu0 %v1591_v54  ;;  %2111 = vmatprep.subr.mxu1 %v1623_v55 }
 0x22e   :  { %2077 = vmatpush3.msra.mxu0 %v1575_v56  ;;  %2112 = vmatpush3.msra.mxu1 %v1607_v57 }
 0x22f   :  { %2116 = vmatprep.subr.mxu0 %v1670_v58  ;;  %2151 = vmatprep.subr.mxu1 %v1702_v59 }
 0x289   :  { %v434_v60 = vpop.f32.mrf.mxu0  ;;  %v505_v61 = vpop.f32.mrf.mxu1 }
 0x28b   :  { %v436_v62 = vpop.f32.mrf.mxu0  ;;  %v507_v63 = vpop.f32.mrf.mxu1 }
 0x292   :  { %v2439_v0 = vpop.f32.mrf.mxu0  ;;  %v2441_v1 = vpop.f32.mrf.mxu1 }
 0x294   :  { %v2443_v3 = vpop.f32.mrf.mxu0  ;;  %v2445_v4 = vpop.f32.mrf.mxu1 }
 0x29c   :  { %v720_v2 = vpop.f32.mrf.mxu0  ;;  %v791_v5 = vpop.f32.mrf.mxu1 }
 0x29d   :  { %v721_v23 = vadd.f32 %v720_v2, %v434_v60  ;;  %v792_v24 = vadd.f32 %v791_v5, %v505_v61  ;;  %v1654_v60 = vld [vmem:[#allocation2 + $0x380] sm:$0xff]  ;;  %v1669_v5 = vld [vmem:[#allocation2 + $0x3f8] sm:$0xff] }
 0x29e   :  { %v722_v6 = vpop.f32.mrf.mxu0  ;;  %v793_v7 = vpop.f32.mrf.mxu1  ;;  %v1686_v61 = vld [vmem:[#allocation2 + $0x480] sm:$0xff] }
 0x29f   :  { %v723_v34 = vadd.f32 %v722_v6, %v436_v62  ;;  %v794_v35 = vadd.f32 %v793_v7, %v507_v63  ;;  %v1701_v6 = vld [vmem:[#allocation2 + $0x4f8] sm:$0xff] }
 0x2a0   :  { %v1653_v7 = vld [vmem:[#allocation2 + $0x378] sm:$0xff] }
 0x2a6   :  { %v2447_v8 = vpop.f32.mrf.mxu0  ;;  %v2449_v9 = vpop.f32.mrf.mxu1 }
 0x2a8   :  { %v2451_v10 = vpop.f32.mrf.mxu0  ;;  %v2453_v11 = vpop.f32.mrf.mxu1 }
 0x2af   :  { %v1008_v30 = vpop.f32.mrf.mxu0 }
 0x2b1   :  { %v1079_v12 = vpop.f32.mrf.mxu1  ;;  %v1010_v13 = vpop.f32.mrf.mxu0 }
 0x2b3   :  { %v1081_v14 = vpop.f32.mrf.mxu1 }
 0x2b9   :  { %v2455_v15 = vpop.f32.mrf.mxu0 }
 0x2bb   :  { %v2457_v16 = vpop.f32.mrf.mxu1  ;;  %v1152_v17 = vpop.f32.mrf.mxu0 }
 0x2bd   :  { %v1223_v18 = vpop.f32.mrf.mxu1 }
 0x2c4   :  { %v1292_v19 = vpop.f32.mrf.mxu0  ;;  %v1363_v20 = vpop.f32.mrf.mxu1 }
 0x2c5   :  { %v1293_v21 = vadd.f32 %v1292_v19, %v1008_v30  ;;  %v1364_v22 = vadd.f32 %v1363_v20, %v1079_v12  ;;  %v1685_v30 = vld [vmem:[#allocation2 + $0x478] sm:$0xff]  ;;  %v1668_v12 = vld [vmem:[#allocation2 + $0x3f0] sm:$0xff]  ;;  %v936_v19 = vadd.f32 %v2453_v11, %v2445_v4  ;;  %v1651_v4 = vld [vmem:[#allocation2 + $0x368] sm:$0xff] }
 0x2c6   :  { %v1294_v25 = vpop.f32.mrf.mxu0  ;;  %v1365_v26 = vpop.f32.mrf.mxu1  ;;  %v360_v20 = vld [vmem:[#allocation4 + $0x428] sm:$0x3]  ;;  %v1683_v11 = vld [vmem:[#allocation2 + $0x468] sm:$0xff] }
 0x2c7   :  { %v1518_v28 = vrot.slane %v1293_v21, 7  ;;  %v1520_v31 = vrot.slane %v1364_v22, 7  ;;  %v1295_v32 = vadd.f32 %v1294_v25, %v1010_v13  ;;  %v1366_v33 = vadd.f32 %v1365_v26, %v1081_v14  ;;  %v1700_v13 = vld [vmem:[#allocation2 + $0x4f0] sm:$0xff]  ;;  %v362_v21 = vld [vmem:[#allocation4 + $0x438] sm:$0x3] }
 0x2c8   :  { %v865_v14 = vadd.f32 %v2451_v10, %v2443_v3  ;;  %v1652_v22 = vld [vmem:[#allocation2 + $0x370] sm:$0xff]  ;;  %v1667_v3 = vld [vmem:[#allocation2 + $0x3e8] sm:$0xff] }
 0x2c9   :  { %v1535_v36 = vsel %vm1534_vm3, %v721_v23, %v1518_v28  ;;  %v1537_v37 = vsel %vm1534_vm3, %v792_v24, %v1520_v31  ;;  %v1519_v38 = vrot.slane %v1295_v32, 7  ;;  %v1521_v39 = vrot.slane %v1366_v33, 7  ;;  %v1684_v23 = vld [vmem:[#allocation2 + $0x470] sm:$0xff]  ;;  %v1699_v10 = vld [vmem:[#allocation2 + $0x4e8] sm:$0xff]  ;;  %v1666_v28 = vld [vmem:[#allocation2 + $0x3e0] sm:$0xff] }
 0x2ca   :  { %v1543_v43 = vadd.f32 %v1535_v36, %v355_v27  ;;  %v1545_v44 = vadd.f32 %v1537_v37, %v357_v29  ;;  %v1698_v29 = vld [vmem:[#allocation2 + $0x4e0] sm:$0xff]  ;;  %v1665_v37 = vld [vmem:[#allocation2 + $0x3d8] sm:$0xff] }
 0x2cb   :  { %v1536_v45 = vsel %vm1534_vm3, %v723_v34, %v1519_v38  ;;  %v1538_v46 = vsel %vm1534_vm3, %v794_v35, %v1521_v39  ;;  %v1650_v33 = vld [vmem:[#allocation2 + $0x360] sm:$0xff]  ;;  %v1697_v38 = vld [vmem:[#allocation2 + $0x4d8] sm:$0xff] }
 0x2cc   :  { %v1544_v47 = vadd.f32 %v1536_v45, %v356_v41  ;;  %v1546_v48 = vadd.f32 %v1538_v46, %v358_v42  ;;  %v1559_v49 = vmul.f32 0.01, %v1543_v43  ;;  %vm1551_vm4 = vcmp.ge.f32.partialorder %v1543_v43, 0.0  ;;  %v1682_v34 = vld [vmem:[#allocation2 + $0x460] sm:$0xff]  ;;  %v1649_v39 = vld [vmem:[#allocation2 + $0x358] sm:$0xff]  ;;  %v1664_v42 = vld [vmem:[#allocation2 + $0x3d0] sm:$0xff] }
 0x2cd   :  { %vm1553_vm5 = vcmp.ge.f32.partialorder %v1545_v44, 0.0  ;;  %v1561_v50 = vmul.f32 0.01, %v1545_v44  ;;  %v1681_v41 = vld [vmem:[#allocation2 + $0x458] sm:$0xff]  ;;  %v1680_v45 = vld [vmem:[#allocation2 + $0x450] sm:$0xff]  ;;  %v1663_v46 = vld [vmem:[#allocation2 + $0x3c8] sm:$0xff] }
 0x2ce   :  { %v2463_v51 = vpop.f32.mrf.mxu0  ;;  %v2465_v52 = vpop.f32.mrf.mxu1  ;;  %vm1552_vm6 = vcmp.ge.f32.partialorder %v1544_v47, 0.0  ;;  %v1560_v53 = vmul.f32 0.01, %v1544_v47  ;;  %vm1554_vm7 = vcmp.ge.f32.partialorder %v1546_v48, 0.0  ;;  %v1562_v54 = vmul.f32 0.01, %v1546_v48 }
 0x2cf   :  { %v1567_v59 = vsel %vm1551_vm4, %v1543_v43, %v1559_v49  ;;  %v1569_v2 = vsel %vm1553_vm5, %v1545_v44, %v1561_v50  ;;  %v1696_v43 = vld [vmem:[#allocation2 + $0x4d0] sm:$0xff]  ;;  %v1506_v49 = vadd.f32 %v2465_v52, %v2457_v16  ;;  %v1647_v50 = vld [vmem:[#allocation2 + $0x348] sm:$0xff]  ;;  %v1645_v16 = vld [vmem:[#allocation2 + $0x338] sm:$0xff] }
 0x2d0   :  { %v1436_v55 = vpop.f32.mrf.mxu0  ;;  %v1507_v56 = vpop.f32.mrf.mxu1  ;;  %v1568_v57 = vsel %vm1552_vm6, %v1544_v47, %v1560_v53  ;;  %v1570_v58 = vsel %vm1554_vm7, %v1546_v48, %v1562_v54  ;;  %v1648_v44 = vld [vmem:[#allocation2 + $0x350] sm:$0xff]  ;;  %v1695_v47 = vld [vmem:[#allocation2 + $0x4c8] sm:$0xff]  ;;  %v1435_v48 = vadd.f32 %v2463_v51, %v2455_v15  ;;  %v1662_v54 = vld [vmem:[#allocation2 + $0x3c0] sm:$0xff] }
 0x2d1   :  { %v1437_v62 = vadd.f32 %v1436_v55, %v1152_v17  ;;  %v1508_v63 = vadd.f32 %v1507_v56, %v1223_v18  ;;  %1771 = vmatprep.mubr.f32.mxu0 %v1568_v57  ;;  %1841 = vmatprep.mubr.f32.mxu1 %v1570_v58  ;;  %v1679_v53 = vld [vmem:[#allocation2 + $0x448] sm:$0xff]  ;;  %v1694_v55 = vld [vmem:[#allocation2 + $0x4c0] sm:$0xff]  ;;  %v1661_v58 = vld [vmem:[#allocation2 + $0x3b8] sm:$0xff]  ;;  %v1524_v51 = vrot.slane %v1506_v49, 7 }
 0x2d2   :  { %1772 = vmatmul.mubr.f32.vlgmr.msra.gmra.mxu0 %v1567_v59  ;;  %1842 = vmatmul.mubr.f32.vlgmr.msra.gmra.mxu1 %v1569_v2  ;;  %v1646_v56 = vld [vmem:[#allocation2 + $0x340] sm:$0xff]  ;;  %v1693_v59 = vld [vmem:[#allocation2 + $0x4b8] sm:$0xff]  ;;  %v1522_v15 = vrot.slane %v1435_v48, 7  ;;  %v1644_v2 = vld [vmem:[#allocation2 + $0x330] sm:$0xff] }
 0x2d3   :  { %v1523_v17 = vrot.slane %v1437_v62, 7  ;;  %v1525_v18 = vrot.slane %v1508_v63, 7  ;;  %2117 = vmatpush3.msra.mxu0 %v1654_v60  ;;  %2152 = vmatpush3.msra.mxu1 %v1686_v61  ;;  %v1678_v57 = vld [vmem:[#allocation2 + $0x440] sm:$0xff]  ;;  %v1677_v52 = vld [vmem:[#allocation2 + $0x438] sm:$0xff]  ;;  %v1660_v60 = vld [vmem:[#allocation2 + $0x3b0] sm:$0xff]  ;;  %v863_v62 = vadd.f32 %v2447_v8, %v2439_v0  ;;  %v934_v63 = vadd.f32 %v2449_v9, %v2441_v1 }
 0x2d4   :  { %2118 = vmatprep.subr.mxu0 %v1669_v5  ;;  %2153 = vmatprep.subr.mxu1 %v1701_v6  ;;  %v1692_v61 = vld [vmem:[#allocation2 + $0x4b0] sm:$0xff]  ;;  %v359_v6 = vld [vmem:[#allocation4 + $0x420] sm:$0x3]  ;;  %v1658_v1 = vld [vmem:[#allocation2 + $0x3a0] sm:$0xff] }
 0x2d5   :  { %v1540_v24 = vsel %vm1534_vm3, %v865_v14, %v1523_v17  ;;  %v1542_v25 = vsel %vm1534_vm3, %v936_v19, %v1525_v18  ;;  %2119 = vmatpush3.msra.mxu0 %v1653_v7  ;;  %2154 = vmatpush3.msra.mxu1 %v1685_v30  ;;  %v1676_v5 = vld [vmem:[#allocation2 + $0x430] sm:$0xff]  ;;  %v1659_v7 = vld [vmem:[#allocation2 + $0x3a8] sm:$0xff]  ;;  %v1541_v14 = vsel %vm1534_vm3, %v934_v63, %v1524_v51  ;;  %v1690_v9 = vld [vmem:[#allocation2 + $0x4a0] sm:$0xff] }
 0x2d6   :  { %2120 = vmatprep.subr.mxu0 %v1668_v12  ;;  %2155 = vmatprep.subr.mxu1 %v1700_v13  ;;  %v1548_v26 = vadd.f32 %v1540_v24, %v360_v20  ;;  %v1550_v27 = vadd.f32 %v1542_v25, %v362_v21  ;;  %v1691_v30 = vld [vmem:[#allocation2 + $0x4a8] sm:$0xff]  ;;  %v1539_v12 = vsel %vm1534_vm3, %v863_v62, %v1522_v15  ;;  %v361_v13 = vld [vmem:[#allocation4 + $0x430] sm:$0x3]  ;;  %v1642_v19 = vld [vmem:[#allocation2 + $0x320] sm:$0xff] }
 0x2d7   :  { %2121 = vmatpush3.msra.mxu0 %v1652_v22  ;;  %2156 = vmatpush3.msra.mxu1 %v1684_v23  ;;  %v1643_v0 = vld [vmem:[#allocation2 + $0x328] sm:$0xff]  ;;  %v1674_v17 = vld [vmem:[#allocation2 + $0x420] sm:$0xff]  ;;  %v1547_v18 = vadd.f32 %v1539_v12, %v359_v6  ;;  %v1549_v20 = vadd.f32 %v1541_v14, %v361_v13  ;;  %v1657_v21 = vld [vmem:[#allocation2 + $0x398] sm:$0xff] }
 0x2d8   :  { %2122 = vmatprep.subr.mxu0 %v1667_v3  ;;  %2157 = vmatprep.subr.mxu1 %v1699_v10  ;;  %vm1556_vm8 = vcmp.ge.f32.partialorder %v1548_v26, 0.0  ;;  %v1564_v31 = vmul.f32 0.01, %v1548_v26  ;;  %vm1558_vm9 = vcmp.ge.f32.partialorder %v1550_v27, 0.0  ;;  %v1566_v32 = vmul.f32 0.01, %v1550_v27 }
 0x2d9   :  { %2123 = vmatpush3.msra.mxu0 %v1651_v4  ;;  %2158 = vmatpush3.msra.mxu1 %v1683_v11  ;;  %v1675_v8 = vld [vmem:[#allocation2 + $0x428] sm:$0xff]  ;;  %v1689_v22 = vld [vmem:[#allocation2 + $0x498] sm:$0xff]  ;;  %v1656_v25 = vld [vmem:[#allocation2 + $0x390] sm:$0xff]  ;;  %vm1555_vm10 = vcmp.ge.f32.partialorder %v1547_v18, 0.0  ;;  %vm1557_vm11 = vcmp.ge.f32.partialorder %v1549_v20, 0.0 }
 0x2da   :  { %2124 = vmatprep.subr.mxu0 %v1666_v28  ;;  %v1572_v35 = vsel %vm1556_vm8, %v1548_v26, %v1564_v31  ;;  %2159 = vmatprep.subr.mxu1 %v1698_v29  ;;  %v1574_v36 = vsel %vm1558_vm9, %v1550_v27, %v1566_v32  ;;  %v1641_v23 = vld [vmem:[#allocation2 + $0x318] sm:$0xff]  ;;  %v1688_v3 = vld [vmem:[#allocation2 + $0x490] sm:$0xff]  ;;  %v1655_v11 = vld [vmem:[#allocation2 + $0x388] sm:$0xff]  ;;  %v1563_v27 = vmul.f32 0.01, %v1547_v18 }
 0x2db   :  { %1911 = vmatprep.mubr.f32.mxu0 %v1572_v35  ;;  %1981 = vmatprep.mubr.f32.mxu1 %v1574_v36  ;;  %v1673_v24 = vld [vmem:[#allocation2 + $0x418] sm:$0xff]  ;;  %v1640_v10 = vld [vmem:[#allocation2 + $0x310] sm:$0xff]  ;;  %v1687_v26 = vld [vmem:[#allocation2 + $0x488] sm:$0xff]  ;;  %v1565_v28 = vmul.f32 0.01, %v1549_v20  ;;  %v1705_v35 = vsub.s32 2, %v2388_v40 }
 0x2dc   :  { %2125 = vmatpush3.msra.mxu0 %v1650_v33  ;;  %2160 = vmatpush3.msra.mxu1 %v1682_v34  ;;  %v1672_v4 = vld [vmem:[#allocation2 + $0x410] sm:$0xff]  ;;  %v1639_v29 = vld [vmem:[#allocation2 + $0x308] sm:$0xff]  ;;  %v1571_v32 = vsel %vm1555_vm10, %v1547_v18, %v1563_v27 }
 0x2dd   :  { %2126 = vmatprep.subr.mxu0 %v1665_v37  ;;  %2161 = vmatprep.subr.mxu1 %v1697_v38  ;;  %v1671_v31 = vld [vmem:[#allocation2 + $0x408] sm:$0xff]  ;;  %v1573_v33 = vsel %vm1557_vm11, %v1549_v20, %v1565_v28  ;;  %v2264_v38 = vld [vmem:[#allocation2 + $0x100] sm:$0xff] }
 0x2de   :  { %2127 = vmatpush3.msra.mxu0 %v1649_v39  ;;  %2162 = vmatpush3.msra.mxu1 %v1681_v41  ;;  %v1706_v39 = vrot.slane %v2264_v38, %v1705_v35 }
 0x2df   :  { %2128 = vmatprep.subr.mxu0 %v1664_v42  ;;  %2163 = vmatprep.subr.mxu1 %v1696_v43 }
 0x2e0   :  { %2129 = vmatpush3.msra.mxu0 %v1648_v44  ;;  %2164 = vmatpush3.msra.mxu1 %v1680_v45 }
 0x2e1   :  { %2130 = vmatprep.subr.mxu0 %v1663_v46  ;;  %2165 = vmatprep.subr.mxu1 %v1695_v47 }
 0x2e2   :  { %2131 = vmatpush3.msra.mxu0 %v1647_v50  ;;  %2166 = vmatpush3.msra.mxu1 %v1679_v53 }
 0x2e3   :  { %2132 = vmatprep.subr.mxu0 %v1662_v54  ;;  %2167 = vmatprep.subr.mxu1 %v1694_v55 }
 0x2e4   :  { %2133 = vmatpush3.msra.mxu0 %v1646_v56  ;;  %2168 = vmatpush3.msra.mxu1 %v1678_v57 }
 0x2e5   :  { %2134 = vmatprep.subr.mxu0 %v1661_v58  ;;  %2169 = vmatprep.subr.mxu1 %v1693_v59 }
 0x2e6   :  { %2135 = vmatpush3.msra.mxu0 %v1645_v16  ;;  %2170 = vmatpush3.msra.mxu1 %v1677_v52 }
 0x2e7   :  { %2136 = vmatprep.subr.mxu0 %v1660_v60  ;;  %2171 = vmatprep.subr.mxu1 %v1692_v61 }
 0x2e8   :  { %2137 = vmatpush3.msra.mxu0 %v1644_v2  ;;  %2172 = vmatpush3.msra.mxu1 %v1676_v5 }
 0x2e9   :  { %2138 = vmatprep.subr.mxu0 %v1659_v7  ;;  %2173 = vmatprep.subr.mxu1 %v1691_v30 }
 0x2ea   :  { %2139 = vmatpush3.msra.mxu0 %v1643_v0  ;;  %2174 = vmatpush3.msra.mxu1 %v1675_v8 }
 0x2eb   :  { %2140 = vmatprep.subr.mxu0 %v1658_v1  ;;  %2175 = vmatprep.subr.mxu1 %v1690_v9 }
 0x2ec   :  { %2141 = vmatpush3.msra.mxu0 %v1642_v19  ;;  %2176 = vmatpush3.msra.mxu1 %v1674_v17 }
 0x2ed   :  { %2142 = vmatprep.subr.mxu0 %v1657_v21  ;;  %2177 = vmatprep.subr.mxu1 %v1689_v22 }
 0x2ee   :  { %2143 = vmatpush3.msra.mxu0 %v1641_v23  ;;  %2178 = vmatpush3.msra.mxu1 %v1673_v24 }
 0x2ef   :  { %2144 = vmatprep.subr.mxu0 %v1656_v25  ;;  %2179 = vmatprep.subr.mxu1 %v1688_v3 }
 0x2f0   :  { %2145 = vmatpush3.msra.mxu0 %v1640_v10  ;;  %2180 = vmatpush3.msra.mxu1 %v1672_v4 }
 0x2f1   :  { %2146 = vmatprep.subr.mxu0 %v1655_v11  ;;  %2181 = vmatprep.subr.mxu1 %v1687_v26 }
 0x2f2   :  { %2147 = vmatpush3.msra.mxu0 %v1639_v29  ;;  %2182 = vmatpush3.msra.mxu1 %v1671_v31 }
 0x2f3   :  { %1912 = vmatmul.mubr.f32.vlgmr.msra.gmra.mxu0 %v1571_v32  ;;  %1982 = vmatmul.mubr.f32.vlgmr.msra.gmra.mxu1 %v1573_v33 }
 0x392   :  { %v2078_v34 = vpop.f32.mrf.mxu0  ;;  %v2113_v37 = vpop.f32.mrf.mxu1 }
 0x394   :  { %v2079_v36 = vpop.f32.mrf.mxu0  ;;  %v2114_v42 = vpop.f32.mrf.mxu1 }
 0x395   :  { %v2080_v41 = vadd.f32 %v2079_v36, %v2078_v34  ;;  %v2115_v46 = vadd.f32 %v2114_v42, %v2113_v37 }
 0x397   :  { %v1774_v43 = vadd.f32 %v2080_v41, %v1706_v39 }
 0x399   :  { %v1844_v49 = vadd.f32 %v2115_v46, %v1774_v43 }
 0x3b3   :  { %v2148_v44 = vpop.f32.mrf.mxu0  ;;  %v2183_v45 = vpop.f32.mrf.mxu1 }
 0x3b5   :  { %v2149_v47 = vpop.f32.mrf.mxu0  ;;  %v2184_v48 = vpop.f32.mrf.mxu1 }
 0x3b6   :  { %v2150_v50 = vadd.f32 %v2149_v47, %v2148_v44  ;;  %v2185_v54 = vadd.f32 %v2184_v48, %v2183_v45 }
 0x3b8   :  { %v1914_v53 = vadd.f32 %v2150_v50, %v1844_v49 }
 0x3ba   :  { %v1984_v55 = vadd.f32 %v2185_v54, %v1914_v53 }
 0x3bc   :  { %1987 = vst [vmem:[%s2491_s3] sm:$0x3] %v1984_v55 }
 0x3bd   :  { %1994 = vsyncpa [#allocation3], 1 }
 0x3be   :  { %1995 = vsyncpa [#allocation5], 1 }

</bundles_post_ra>
